<compile_context>
chip_gen: v5e
topology: v5e:2x2
jax: 0.10.0
libtpu: 0.0.40
codegen_flags: <defaults>
</compile_context>

<pallas_src>
import jax
import jax.numpy as jnp
from jax.experimental import pallas as pl
from jax.experimental.pallas import tpu as pltpu


# ---------------------------------------------------------------------------
# Fused kernel: one grid step per batch element runs the entire forward pass.
# ---------------------------------------------------------------------------
def fused_video_cpc_kernel(x_ref, weff_ref, bpre_ref, wemb_ref, bemb_ref,
                           wctx_ref, bctx_ref, o_emb_ref, o_ctx_ref):
    # x_ref:    (1, C, T, S)   with S = H*W
    # weff_ref: (C, F, S)      effective pre-conv weight (spatial mean folded in)
    # bpre_ref: (F, 1)
    # wemb_ref: (E, K_emb*F)   im2col embedder weight
    # bemb_ref: (E, 1)
    # wctx_ref: (Ctx, K_ctx*E) im2col contexter weight
    # bctx_ref: (Ctx, 1)
    # o_emb_ref: (1, E, T_emb)     o_ctx_ref: (1, Ctx, T_ctx)
    x = x_ref[0]                                     # (C, T, S)
    weff = weff_ref[...]                             # (C, F, S)

    # ---- Stage 1: frame conv + spatial mean as one batched matmul over S.
    # feat[f, t] = sum_{c,s} Weff[c, f, s] * x[c, t, s] + b_pre[f]
    feat_c = jax.lax.dot_general(
        weff, x,
        dimension_numbers=(((2,), (2,)), ((0,), (0,))),
        preferred_element_type=jnp.float32)          # (C, F, T)
    # Sum over C is a leading-dim elementwise add (VPU), not a cross-lane op.
    feat = jnp.sum(feat_c, axis=0) + bpre_ref[...]   # (F, T)

    # ---- Stage 2: Embedder = valid Conv1d(K_emb) + ReLU via im2col.
    F, T = feat.shape
    E = wemb_ref.shape[0]
    K_emb = wemb_ref.shape[1] // F
    T_emb = T - (K_emb - 1)
    slab = jnp.concatenate(
        [feat[:, k:k + T_emb] for k in range(K_emb)], axis=0)       # (K_emb*F, T_emb)
    emb = jnp.maximum(
        jnp.dot(wemb_ref[...], slab, preferred_element_type=jnp.float32)
        + bemb_ref[...], 0.0)                                       # (E, T_emb)
    o_emb_ref[0] = emb.astype(o_emb_ref.dtype)

    # ---- Stage 3: left zero-pad by crop_pre, Contexter Conv1d(K_ctx) + ReLU.
    K_ctx = wctx_ref.shape[1] // E
    T_ctx = o_ctx_ref.shape[2]
    crop_pre = (T_ctx + K_ctx - 1) - T_emb
    emb_pad = jnp.concatenate(
        [jnp.zeros((E, crop_pre), jnp.float32), emb], axis=1)       # (E, crop_pre+T_emb)
    slab2 = jnp.concatenate(
        [emb_pad[:, k:k + T_ctx] for k in range(K_ctx)], axis=0)    # (K_ctx*E, T_ctx)
    ctx = jnp.maximum(
        jnp.dot(wctx_ref[...], slab2, preferred_element_type=jnp.float32)
        + bctx_ref[...], 0.0)                                       # (Ctx, T_ctx)
    o_ctx_ref[0] = ctx.astype(o_ctx_ref.dtype)


# ---------------------------------------------------------------------------
# Forward wrapper.
# ---------------------------------------------------------------------------
@jax.jit
def video_conv_cpc_forward(kp, X):
    # X: (B, C, T, H, W) float32 (NCTHW).  Returns (X_emb NCT, X_ctx NCT).
    B, C, T, H, W = X.shape
    X_r = X.reshape(B, C, T, H * W)           # free reshape: merge trailing dims

    weff, b_pre = kp["weff"], kp["b_pre"]
    w_emb, b_emb = kp["w_emb"], kp["b_emb"]
    w_ctx, b_ctx = kp["w_ctx"], kp["b_ctx"]
    F = weff.shape[1]
    E = w_emb.shape[0]
    Ctx = w_ctx.shape[0]
    K_emb = w_emb.shape[1] // F
    K_ctx = w_ctx.shape[1] // E
    T_emb = T - (K_emb - 1)
    crop_pre, _ = get_crops(K_emb, K_ctx)
    T_ctx = crop_pre + T_emb - (K_ctx - 1)

    X_emb, X_ctx = pl.pallas_call(
        fused_video_cpc_kernel,
        out_shape=(jax.ShapeDtypeStruct((B, E, T_emb), jnp.float32),
                   jax.ShapeDtypeStruct((B, Ctx, T_ctx), jnp.float32)),
        grid=(B,),
        in_specs=[
            pl.BlockSpec((1, C, T, H * W), lambda i: (i, 0, 0, 0)),
            # Constant index_maps: weight blocks are DMA'd once, not per step.
            pl.BlockSpec(weff.shape, lambda i: (0, 0, 0)),
            pl.BlockSpec(b_pre.shape, lambda i: (0, 0)),
            pl.BlockSpec(w_emb.shape, lambda i: (0, 0)),
            pl.BlockSpec(b_emb.shape, lambda i: (0, 0)),
            pl.BlockSpec(w_ctx.shape, lambda i: (0, 0)),
            pl.BlockSpec(b_ctx.shape, lambda i: (0, 0)),
        ],
        out_specs=(pl.BlockSpec((1, E, T_emb), lambda i: (i, 0, 0)),
                   pl.BlockSpec((1, Ctx, T_ctx), lambda i: (i, 0, 0))),
        # Batch steps are independent -> "parallel" uses both TCs on v7x.
        compiler_params=pltpu.CompilerParams(dimension_semantics=("parallel",)),
    )(X_r, weff, b_pre, w_emb, b_emb, w_ctx, b_ctx)
    return X_emb, X_ctx


# ---------------------------------------------------------------------------
# Parameter init (mirrors kaiming_normal_(mode='fan_out'), zero biases) and
# one-time weight-layout preparation (hoisted out of the forward pass).
# ---------------------------------------------------------------------------
def _kaiming_fan_out(key, shape, fan_out):
    return ((2.0 / fan_out) ** 0.5) * jax.random.normal(key, shape, jnp.float32)


def init_params(key, num_channels, num_features, num_embeddings, num_context,
                emb_kernel=5, ctx_kernel=3):
    k1, k2, k3 = jax.random.split(key, 3)
    w_pre = _kaiming_fan_out(k1, (num_features, num_channels, 1, 3, 3),
                             fan_out=num_features * 1 * 3 * 3)
    b_pre = jnp.zeros((num_features,), jnp.float32)
    w_emb = _kaiming_fan_out(k2, (num_embeddings, num_features, emb_kernel),
                             fan_out=num_embeddings * emb_kernel)
    b_emb = jnp.zeros((num_embeddings,), jnp.float32)
    w_ctx = _kaiming_fan_out(k3, (num_context, num_embeddings, ctx_kernel),
                             fan_out=num_context * ctx_kernel)
    b_ctx = jnp.zeros((num_context,), jnp.float32)
    return dict(w_pre=w_pre, b_pre=b_pre, w_emb=w_emb, b_emb=b_emb,
                w_ctx=w_ctx, b_ctx=b_ctx)


def prepare_kernel_params(params, H, W):
    """Precompute kernel-layout weights once (not per forward call)."""
    w_pre = params["w_pre"]                  # (F, C, 1, 3, 3)
    F, C = w_pre.shape[:2]
    Ho, Wo = H - 2, W - 2
    w = w_pre[:, :, 0]                       # (F, C, 3, 3)
    # Effective weight folding the valid-window spatial mean into the conv:
    #   Weff[f,c,p,q] = (1/(Ho*Wo)) * sum_{(di,dj): valid window covers (p,q)} w[f,c,di,dj]
    weff = jnp.zeros((F, C, H, W), jnp.float32)
    for di in range(3):
        for dj in range(3):
            weff = weff.at[:, :, di:di + Ho, dj:dj + Wo].add(
                w[:, :, di, dj][:, :, None, None])
    weff = (weff / float(Ho * Wo)).transpose(1, 0, 2, 3).reshape(C, F, H * W)

    w_emb = params["w_emb"]                  # (E, F, K_emb)
    w_ctx = params["w_ctx"]                  # (Ctx, E, K_ctx)
    E, _, K_emb = w_emb.shape
    Ctx, _, K_ctx = w_ctx.shape
    # im2col weights: row order is k-major, channel-minor to match the slabs.
    w_emb_i2c = jnp.transpose(w_emb, (0, 2, 1)).reshape(E, K_emb * F)
    w_ctx_i2c = jnp.transpose(w_ctx, (0, 2, 1)).reshape(Ctx, K_ctx * E)

    return dict(weff=weff, b_pre=params["b_pre"][:, None],
                w_emb=w_emb_i2c, b_emb=params["b_emb"][:, None],
                w_ctx=w_ctx_i2c, b_ctx=params["b_ctx"][:, None])


def get_crops(emb_kernel, ctx_kernel):
    # Mirrors ConvCPC.get_crops (dummy length 133, all-valid convolutions).
    initial_length = 133
    post_emb = initial_length - (emb_kernel - 1)
    crop_pre = (initial_length - post_emb) // 2
    crop_post = crop_pre
    post_ctx = post_emb - (ctx_kernel - 1)
    crop_pre += post_emb - post_ctx
    return crop_pre, crop_post


# ---------------------------------------------------------------------------
# Pure-JAX reference (for a numerical sanity check only).
# ---------------------------------------------------------------------------
def _reference_forward(params, X, emb_kernel=5, ctx_kernel=3):
    B, C, T, H, W = X.shape
    w = params["w_pre"][:, :, 0]             # (F, C, 3, 3)
    Ho, Wo = H - 2, W - 2
    out = jnp.zeros((B, w.shape[0], T, Ho, Wo), jnp.float32)
    for di in range(3):
        for dj in range(3):
            out = out + jnp.einsum('fc,bcthw->bfthw', w[:, :, di, dj],
                                   X[:, :, :, di:di + Ho, dj:dj + Wo])
    feat = out.mean(axis=(3, 4)) + params["b_pre"][None, :, None]   # (B, F, T)

    E = params["w_emb"].shape[0]
    T_emb = T - (emb_kernel - 1)
    emb = jnp.zeros((B, E, T_emb), jnp.float32)
    for k in range(emb_kernel):
        emb = emb + jnp.einsum('ef,bft->bet', params["w_emb"][:, :, k],
                               feat[:, :, k:k + T_emb])
    emb = jax.nn.relu(emb + params["b_emb"][None, :, None])

    crop_pre, _ = get_crops(emb_kernel, ctx_kernel)
    emb_p = jnp.concatenate(
        [jnp.zeros((B, E, crop_pre), jnp.float32), emb], axis=-1)
    Cx = params["w_ctx"].shape[0]
    T_ctx = emb_p.shape[-1] - (ctx_kernel - 1)
    ctx = jnp.zeros((B, Cx, T_ctx), jnp.float32)
    for k in range(ctx_kernel):
        ctx = ctx + jnp.einsum('ce,bet->bct', params["w_ctx"][:, :, k],
                               emb_p[:, :, k:k + T_ctx])
    ctx = jax.nn.relu(ctx + params["b_ctx"][None, :, None])
    return emb, ctx


if __name__ == "__main__":
    key = jax.random.PRNGKey(0)
    kp_key, kx = jax.random.split(key)

    B, C, T, H, W = 2, 3, 16, 8, 8
    num_features, num_embeddings, num_context = 8, 16, 16

    params = init_params(kp_key, C, num_features, num_embeddings, num_context)
    kparams = prepare_kernel_params(params, H, W)
    X = jax.random.normal(kx, (B, C, T, H, W), dtype=jnp.float32)

    X_emb, X_ctx = video_conv_cpc_forward(kparams, X)
    jax.block_until_ready((X_emb, X_ctx))

    assert X_emb.shape == (B, num_embeddings, T - 4)
    assert X_ctx.shape == (B, num_context, T - 2)

    # Numerical sanity check against a pure-JAX reference.
    ref_emb, ref_ctx = _reference_forward(params, X)
    assert jnp.allclose(X_emb, ref_emb, atol=1e-3, rtol=1e-3)
    assert jnp.allclose(X_ctx, ref_ctx, atol=1e-3, rtol=1e-3)

    print("KERNEL_OK")
</pallas_src>

<mosaic_0001>
module attributes {stable_mosaic.version = 11 : i64} {
  func.func @fused_video_cpc_kernel(%arg0: i32, %arg1: memref<1x3x16x64xf32, #tpu.memory_space<vmem>>, %arg2: memref<3x8x64xf32, #tpu.memory_space<vmem>>, %arg3: memref<8x1xf32, #tpu.memory_space<vmem>>, %arg4: memref<16x40xf32, #tpu.memory_space<vmem>>, %arg5: memref<16x1xf32, #tpu.memory_space<vmem>>, %arg6: memref<16x48xf32, #tpu.memory_space<vmem>>, %arg7: memref<16x1xf32, #tpu.memory_space<vmem>>, %arg8: memref<1x16x12xf32, #tpu.memory_space<vmem>>, %arg9: memref<1x16x14xf32, #tpu.memory_space<vmem>>) attributes {dimension_semantics = [#tpu.dimension_semantics<parallel>], iteration_bounds = array<i64: 2>, scalar_prefetch = 0 : i64, scratch_operands = 0 : i64, tpu.core_type = #tpu.core_type<tc>, window_params = [{transform_indices = @transform_0, window_bounds = array<i64: 1, 3, 16, 64>}, {pipeline_mode = #tpu.pipeline_mode<synchronous>, transform_indices = @transform_1, window_bounds = array<i64: 3, 8, 64>}, {pipeline_mode = #tpu.pipeline_mode<synchronous>, transform_indices = @transform_2, window_bounds = array<i64: 8, 1>}, {pipeline_mode = #tpu.pipeline_mode<synchronous>, transform_indices = @transform_3, window_bounds = array<i64: 16, 40>}, {pipeline_mode = #tpu.pipeline_mode<synchronous>, transform_indices = @transform_4, window_bounds = array<i64: 16, 1>}, {pipeline_mode = #tpu.pipeline_mode<synchronous>, transform_indices = @transform_5, window_bounds = array<i64: 16, 48>}, {pipeline_mode = #tpu.pipeline_mode<synchronous>, transform_indices = @transform_6, window_bounds = array<i64: 16, 1>}, {transform_indices = @transform_7, window_bounds = array<i64: 1, 16, 12>}, {transform_indices = @transform_8, window_bounds = array<i64: 1, 16, 14>}]} {
    %c0 = arith.constant 0 : index
    %c0_0 = arith.constant 0 : index
    %c0_1 = arith.constant 0 : index
    %c0_2 = arith.constant 0 : index
    %0 = vector.load %arg1[%c0, %c0_0, %c0_1, %c0_2] : memref<1x3x16x64xf32, #tpu.memory_space<vmem>>, vector<1x3x16x64xf32>
    %1 = vector.shape_cast %0 : vector<1x3x16x64xf32> to vector<3x16x64xf32>
    %c0_3 = arith.constant 0 : index
    %c0_4 = arith.constant 0 : index
    %c0_5 = arith.constant 0 : index
    %2 = vector.load %arg2[%c0_3, %c0_4, %c0_5] : memref<3x8x64xf32, #tpu.memory_space<vmem>>, vector<3x8x64xf32>
    %cst = arith.constant dense<0.000000e+00> : vector<3x8x16xf32>
    %3 = tpu.matmul %2, %1, %cst {dimension_numbers = #tpu.dot_dimension_numbers<[2], [2], [1], [1], [0, 0, 0, 1, 1, 1], [0], [0]>} : vector<3x8x64xf32>, vector<3x16x64xf32>, vector<3x8x16xf32> -> vector<3x8x16xf32>
    %cst_6 = arith.constant dense<0.000000e+00> : vector<8x16xf32>
    %4 = vector.multi_reduction <add>, %3, %cst_6 [0] : vector<3x8x16xf32> to vector<8x16xf32>
    %c0_7 = arith.constant 0 : index
    %c0_8 = arith.constant 0 : index
    %5 = vector.load %arg3[%c0_7, %c0_8] : memref<8x1xf32, #tpu.memory_space<vmem>>, vector<8x1xf32>
    %6 = vector.broadcast %5 : vector<8x1xf32> to vector<8x16xf32>
    %7 = arith.addf %4, %6 : vector<8x16xf32>
    %8 = vector.extract_strided_slice %7 {offsets = [0, 0], sizes = [8, 12], strides = [1, 1]} : vector<8x16xf32> to vector<8x12xf32>
    %9 = vector.extract_strided_slice %7 {offsets = [0, 1], sizes = [8, 12], strides = [1, 1]} : vector<8x16xf32> to vector<8x12xf32>
    %10 = vector.extract_strided_slice %7 {offsets = [0, 2], sizes = [8, 12], strides = [1, 1]} : vector<8x16xf32> to vector<8x12xf32>
    %11 = vector.extract_strided_slice %7 {offsets = [0, 3], sizes = [8, 12], strides = [1, 1]} : vector<8x16xf32> to vector<8x12xf32>
    %12 = vector.extract_strided_slice %7 {offsets = [0, 4], sizes = [8, 12], strides = [1, 1]} : vector<8x16xf32> to vector<8x12xf32>
    %13 = tpu.concatenate %8, %9, %10, %11, %12 in 0 : vector<8x12xf32>, vector<8x12xf32>, vector<8x12xf32>, vector<8x12xf32>, vector<8x12xf32> -> vector<40x12xf32>
    %c0_9 = arith.constant 0 : index
    %c0_10 = arith.constant 0 : index
    %14 = vector.load %arg4[%c0_9, %c0_10] : memref<16x40xf32, #tpu.memory_space<vmem>>, vector<16x40xf32>
    %cst_11 = arith.constant dense<0.000000e+00> : vector<16x12xf32>
    %15 = tpu.matmul %14, %13, %cst_11 {dimension_numbers = #tpu.dot_dimension_numbers<[1], [0], [0], [1], [0, 0, 1, 1], [], []>} : vector<16x40xf32>, vector<40x12xf32>, vector<16x12xf32> -> vector<16x12xf32>
    %c0_12 = arith.constant 0 : index
    %c0_13 = arith.constant 0 : index
    %16 = vector.load %arg5[%c0_12, %c0_13] : memref<16x1xf32, #tpu.memory_space<vmem>>, vector<16x1xf32>
    %17 = vector.broadcast %16 : vector<16x1xf32> to vector<16x12xf32>
    %18 = arith.addf %15, %17 : vector<16x12xf32>
    %cst_14 = arith.constant 0.000000e+00 : f32
    %19 = vector.broadcast %cst_14 : f32 to vector<16x12xf32>
    %20 = arith.maximumf %18, %19 : vector<16x12xf32>
    %c0_15 = arith.constant 0 : index
    %c0_16 = arith.constant 0 : index
    %c0_17 = arith.constant 0 : index
    %21 = vector.load %arg8[%c0_15, %c0_16, %c0_17] : memref<1x16x12xf32, #tpu.memory_space<vmem>>, vector<1x16x12xf32>
    %22 = vector.shape_cast %21 : vector<1x16x12xf32> to vector<16x12xf32>
    %23 = vector.shape_cast %20 : vector<16x12xf32> to vector<1x16x12xf32>
    tpu.vector_store %arg8[%c0_15, %c0_16, %c0_17], %23 {strides = array<i32>} : memref<1x16x12xf32, #tpu.memory_space<vmem>>, vector<1x16x12xf32>,
    %cst_18 = arith.constant 0.000000e+00 : f32
    %24 = vector.broadcast %cst_18 : f32 to vector<16x4xf32>
    %25 = tpu.concatenate %24, %20 in 1 : vector<16x4xf32>, vector<16x12xf32> -> vector<16x16xf32>
    %26 = vector.extract_strided_slice %25 {offsets = [0, 0], sizes = [16, 14], strides = [1, 1]} : vector<16x16xf32> to vector<16x14xf32>
    %27 = vector.extract_strided_slice %25 {offsets = [0, 1], sizes = [16, 14], strides = [1, 1]} : vector<16x16xf32> to vector<16x14xf32>
    %28 = vector.extract_strided_slice %25 {offsets = [0, 2], sizes = [16, 14], strides = [1, 1]} : vector<16x16xf32> to vector<16x14xf32>
    %29 = tpu.concatenate %26, %27, %28 in 0 : vector<16x14xf32>, vector<16x14xf32>, vector<16x14xf32> -> vector<48x14xf32>
    %c0_19 = arith.constant 0 : index
    %c0_20 = arith.constant 0 : index
    %30 = vector.load %arg6[%c0_19, %c0_20] : memref<16x48xf32, #tpu.memory_space<vmem>>, vector<16x48xf32>
    %cst_21 = arith.constant dense<0.000000e+00> : vector<16x14xf32>
    %31 = tpu.matmul %30, %29, %cst_21 {dimension_numbers = #tpu.dot_dimension_numbers<[1], [0], [0], [1], [0, 0, 1, 1], [], []>} : vector<16x48xf32>, vector<48x14xf32>, vector<16x14xf32> -> vector<16x14xf32>
    %c0_22 = arith.constant 0 : index
    %c0_23 = arith.constant 0 : index
    %32 = vector.load %arg7[%c0_22, %c0_23] : memref<16x1xf32, #tpu.memory_space<vmem>>, vector<16x1xf32>
    %33 = vector.broadcast %32 : vector<16x1xf32> to vector<16x14xf32>
    %34 = arith.addf %31, %33 : vector<16x14xf32>
    %cst_24 = arith.constant 0.000000e+00 : f32
    %35 = vector.broadcast %cst_24 : f32 to vector<16x14xf32>
    %36 = arith.maximumf %34, %35 : vector<16x14xf32>
    %c0_25 = arith.constant 0 : index
    %c0_26 = arith.constant 0 : index
    %c0_27 = arith.constant 0 : index
    %37 = vector.load %arg9[%c0_25, %c0_26, %c0_27] : memref<1x16x14xf32, #tpu.memory_space<vmem>>, vector<1x16x14xf32>
    %38 = vector.shape_cast %37 : vector<1x16x14xf32> to vector<16x14xf32>
    %39 = vector.shape_cast %36 : vector<16x14xf32> to vector<1x16x14xf32>
    tpu.vector_store %arg9[%c0_25, %c0_26, %c0_27], %39 {strides = array<i32>} : memref<1x16x14xf32, #tpu.memory_space<vmem>>, vector<1x16x14xf32>,
    return
  }
  func.func @transform_0(%arg0: i32) -> (i32, i32, i32, i32) {
    %c0_i32 = arith.constant 0 : i32
    %c0_i32_0 = arith.constant 0 : i32
    %c0_i32_1 = arith.constant 0 : i32
    %c0_i32_2 = arith.constant 0 : i32
    return %arg0, %c0_i32, %c0_i32_0, %c0_i32_1 : i32, i32, i32, i32
  }
  func.func @transform_1(%arg0: i32) -> (i32, i32, i32) {
    %c0_i32 = arith.constant 0 : i32
    %c0_i32_0 = arith.constant 0 : i32
    %c0_i32_1 = arith.constant 0 : i32
    %c0_i32_2 = arith.constant 0 : i32
    return %c0_i32, %c0_i32_0, %c0_i32_1 : i32, i32, i32
  }
  func.func @transform_2(%arg0: i32) -> (i32, i32) {
    %c0_i32 = arith.constant 0 : i32
    %c0_i32_0 = arith.constant 0 : i32
    %c0_i32_1 = arith.constant 0 : i32
    return %c0_i32, %c0_i32_0 : i32, i32
  }
  func.func @transform_3(%arg0: i32) -> (i32, i32) {
    %c0_i32 = arith.constant 0 : i32
    %c0_i32_0 = arith.constant 0 : i32
    %c0_i32_1 = arith.constant 0 : i32
    return %c0_i32, %c0_i32_0 : i32, i32
  }
  func.func @transform_4(%arg0: i32) -> (i32, i32) {
    %c0_i32 = arith.constant 0 : i32
    %c0_i32_0 = arith.constant 0 : i32
    %c0_i32_1 = arith.constant 0 : i32
    return %c0_i32, %c0_i32_0 : i32, i32
  }
  func.func @transform_5(%arg0: i32) -> (i32, i32) {
    %c0_i32 = arith.constant 0 : i32
    %c0_i32_0 = arith.constant 0 : i32
    %c0_i32_1 = arith.constant 0 : i32
    return %c0_i32, %c0_i32_0 : i32, i32
  }
  func.func @transform_6(%arg0: i32) -> (i32, i32) {
    %c0_i32 = arith.constant 0 : i32
    %c0_i32_0 = arith.constant 0 : i32
    %c0_i32_1 = arith.constant 0 : i32
    return %c0_i32, %c0_i32_0 : i32, i32
  }
  func.func @transform_7(%arg0: i32) -> (i32, i32, i32) {
    %c0_i32 = arith.constant 0 : i32
    %c0_i32_0 = arith.constant 0 : i32
    %c0_i32_1 = arith.constant 0 : i32
    return %arg0, %c0_i32, %c0_i32_0 : i32, i32, i32
  }
  func.func @transform_8(%arg0: i32) -> (i32, i32, i32) {
    %c0_i32 = arith.constant 0 : i32
    %c0_i32_0 = arith.constant 0 : i32
    %c0_i32_1 = arith.constant 0 : i32
    return %arg0, %c0_i32, %c0_i32_0 : i32, i32, i32
  }
}

</mosaic_0001>

<bundles_post_ra>
// kernel: video_conv_cpc_forward.1
= control target key start
LH: loop header
LB: loop body
LE: loop exit
PB: predicated region body
PF: predicated region fallthrough
CT: control target
= control target key end

     0   :  { %s770_s27 = smov 0   ;;  %s850_s0 = inlined_call_operand.vmem [shape: f32[2,3,16,64], index: 0, kind: input, shape index: {}]   ;;  %s851_s1 = inlined_call_operand.vmem [shape: f32[3,8,64], index: 1, kind: input, shape index: {}]   ;;  %s852_s2 = inlined_call_operand.vmem [shape: f32[8,1], index: 2, kind: input, shape index: {}]   ;;  %s853_s3 = inlined_call_operand.vmem [shape: f32[16,40], index: 3, kind: input, shape index: {}]   ;;  %s854_s4 = inlined_call_operand.vmem [shape: f32[16,1], index: 4, kind: input, shape index: {}]   ;;  %s855_s5 = inlined_call_operand.vmem [shape: f32[16,48], index: 5, kind: input, shape index: {}]   ;;  %s856_s6 = inlined_call_operand.vmem [shape: f32[16,1], index: 6, kind: input, shape index: {}]   ;;  %s857_s7 = inlined_call_operand.vmem [shape: f32[2,16,12], index: 7, kind: output, shape index: {0}]   ;;  %s858_s8 = inlined_call_operand.vmem [shape: f32[2,16,14], index: 8, kind: output, shape index: {1}]  }
   0x1 LB: > { %s653_s28 = sadd.s32 4294967295, %s717_s27   ;;  %p657_p0 = scmp.ge.s32.totalorder %s717_s27, 1  ;;  %s717_s27 = sphi %s770_s27, %s19_s27  }
   0x2   : > { %p265_p1 = scmp.lt.s32.totalorder %s717_s27, 3 }
   0x4   : > { %p266_p2 = pnand %p657_p0, %p265_p1 }
   0x5   : > { %p304_p3 = scmp.lt.s32.totalorder (!%p266_p2), %s653_s28, 1  ;;  %s720_s19 = smov (!%p266_p2), 127  }
   0x6   : > { %269 = sbr.rel (%p266_p2) target bundleno = 821 (0x335), region = 48  ;;  %s721_s20 = smov (!%p266_p2), 125  }
   0x7   : > { %s722_s21 = smov (!%p266_p2), 124   ;;  %s723_s24 = smov (!%p266_p2), 126  }
   0x8   : > { %s724_s15 = smov (!%p266_p2), 4  }
   0xb   : > { %v719_v0 = vmov 0   ;;  %v422_v1 = vld [vmem:[%s852_s2] sm:$0xff]  ;;  %s860_s28 = smov (!%p304_p3, %s653_s28), 1  ;;  %vm328_vm0 = vcmask 523264   ;;  %v327_v8 = vld [vmem:[%s851_s1 + $0x10] sm:$0xff]  ;;  %v326_v10 = vld [vmem:[%s851_s1 + $0x8] sm:$0xff] }
   0xc   : > { %699 = vset.pattern.permute.xlu0 %v719_v0  ;;  %700 = vset.pattern.permute.xlu2 %v719_v0  ;;  %s684_s9 = smul.u32 48, %s860_s28  ;;  %v325_v7 = vld [vmem:[%s851_s1] sm:$0xff]  ;;  %vm416_vm1 = vcmask 130048   ;;  %v445_v22 = vld [vmem:[%s854_s4 + $0x8] sm:$0xff]  ;;  %vm456_vm2 = vcmask 326656   ;;  %s682_s11 = sshll.u32 %s860_s28, 4 }
   0xd   : > { %425 = vperm.xlu0 %699, %v422_v1   ;;  %v444_v21 = vld [vmem:[%s854_s4] sm:$0xff]  ;;  %v443_v28 = vld [vmem:[%s853_s3 + $0x8] sm:$0xff]  ;;  %s313_s14 = scalar_lea.vmem %s857_s7, %s682_s11  ;;  %vm488_vm3 = vcmask 97280   ;;  %vm499_vm4 = vcmask 31744   ;;  %vm530_vm6 = vcmask 392192   ;;  %s318_s26 = scalar_lea.vmem %s858_s8, %s682_s11  ;;  %vm562_vm7 = vcmask 113664  }
   0xe   : > { %s308_s12 = scalar_lea.vmem %s850_s0, %s684_s9  ;;  %v442_v27 = vld [vmem:[%s853_s3] sm:$0xff]  ;;  %v519_v43 = vld [vmem:[%s856_s6 + $0x8] sm:$0xff]  ;;  %vm674_vm5 = vmneg %vm499_vm4 }
   0xf   : > { %v320_v2 = vld [vmem:[%s308_s12 + $0x8] sm:$0xff]  ;;  %v319_v4 = vld [vmem:[%s308_s12] sm:$0xff]  ;;  %v322_v6 = vld [vmem:[%s308_s12 + $0x18] sm:$0xff] }
  0x10   : > { %v324_v3 = vld [vmem:[%s308_s12 + $0x28] sm:$0xff]  ;;  %663 = vmatpush.xpose.msk.msra.mxu1 %vm328_vm0, %v320_v2  ;;  %v323_v5 = vld [vmem:[%s308_s12 + $0x20] sm:$0xff]  ;;  %v321_v9 = vld [vmem:[%s308_s12 + $0x10] sm:$0xff] }
  0x11   : > { %669 = vmatpush.xpose.msk.msra.mxu2 %vm328_vm0, %v324_v3  ;;  %v518_v36 = vld [vmem:[%s856_s6] sm:$0xff]  ;;  %v517_v51 = vld [vmem:[%s855_s5 + $0x8] sm:$0xff] }
  0x12   : > { %v516_v50 = vld [vmem:[%s855_s5] sm:$0xff] }
  0x14   : > { %664 = vmatpush.xpose.msk.msra.mxu1 %vm328_vm0, %v319_v4 }
  0x15   : > { %670 = vmatpush.xpose.msk.msra.mxu2 %vm328_vm0, %v323_v5 }
  0x17   : > { %665 = vmatmul.msk.f32.vlgmr.msra.gmra.mxu1 %vm328_vm0, %v325_v7 }
  0x18   : > { %666 = vmatpush.xpose.msk.msrb.mxu1 %vm328_vm0, %v322_v6  ;;  %671 = vmatmul.msk.f32.vlgmr.msra.gmra.mxu2 %vm328_vm0, %v327_v8 }
  0x1c   : > { %667 = vmatpush.xpose.msk.msrb.mxu1 %vm328_vm0, %v321_v9 }
  0x1f   : > { %668 = vmatmul.msk.f32.vlgmr.msrb.gmra.mxu1 %vm328_vm0, %v326_v10 }
  0x7f   : > { %v426_v18 = vpop.permute.xlu0 %425 }
  0x94   : > { %v355_v11 = vpop.f32.mrf.mxu1 }
  0x95   : > { %v417_v14 = vsel %vm416_vm1, %v355_v11, 0.0 }
  0x9b   : > { %v413_v12 = vpop.f32.mrf.mxu2 }
  0x9c   : > { %v384_v13 = vpop.f32.mrf.mxu1  ;;  %v420_v16 = vsel %vm416_vm1, %v413_v12, 0.0 }
  0x9d   : > { %v418_v15 = vsel %vm416_vm1, %v384_v13, 0.0 }
  0x9e   : > { %v419_v17 = vadd.f32 %v418_v15, %v417_v14 }
  0xa0   : > { %v421_v19 = vadd.f32 %v420_v16, %v419_v17 }
  0xa2   : > { %v428_v20 = vadd.f32 %v426_v18, %v421_v19 }
  0xa4   : > { %430 = vrot.lane.b32.xlu2 %v428_v20, %s720_s19  ;;  %436 = vrot.lane.b32.xlu1 %v428_v20, %s721_s20 }
  0xa5   : > { %439 = vrot.lane.b32.xlu0 %v428_v20, %s722_s21 }
  0xac   : > { %433 = vrot.lane.b32.xlu1 %v428_v20, %s723_s24  ;;  %453 = vperm.xlu2 %700, %v445_v22  }
  0xad   : > { %448 = vperm.xlu0 %699, %v444_v21  }
  0xfe   : > { %v431_v26 = vpop.permute.xlu2 %430 }
 0x106   : > { %v454_v33 = vpop.permute.xlu2 %453 }
 0x116   : > { %v437_v23 = vpop.permute.xlu1 %436 }
 0x117   : > { %v440_v24 = vpop.permute.xlu0 %439 }
 0x118   : > { %474 = vmatpush.msra.mxu3 %v440_v24 }
 0x11a   : > { %475 = vmatpush.msra.mxu3 %v437_v23 }
 0x11e   : > { %v434_v25 = vpop.permute.xlu1 %433 }
 0x11f   : > { %476 = vmatpush.msra.mxu3 %v434_v25  ;;  %v449_v29 = vpop.permute.xlu0 %448 }
 0x121   : > { %477 = vmatpush.msra.mxu3 %v431_v26 }
 0x123   : > { %478 = vmatpush.msra.mxu3 %v428_v20 }
 0x124   : > { %672 = vmatmul.msk.f32.vlgmr.msra.gmra.mxu3 %vm456_vm2, %v442_v27 }
 0x12c   : > { %673 = vmatmul.msk.f32.gmra.mxu3 %vm456_vm2, %v443_v28 }
 0x1a7   : > { %v480_v30 = vpop.f32.mrf.mxu3 }
 0x1a8   : > { %v481_v31 = vadd.f32 %v480_v30, %v449_v29 }
 0x1aa   : > { %v486_v32 = vmax.f32 %v481_v31, 0.0 }
 0x1ac   : > { %489 = vst.msk [vmem:[%s313_s14] sm:$0xff] %vm488_vm3, %v486_v32  ;;  %493 = vrot.lane.b32.xlu2 %v486_v32, %s724_s15 }
 0x1af   : > { %v483_v34 = vpop.f32.mrf.mxu3 }
 0x1b0   : > { %v484_v35 = vadd.f32 %v483_v34, %v454_v33 }
 0x1b2   : > { %v487_v37 = vmax.f32 %v484_v35, 0.0 }
 0x1b4   : > { %490 = vst.msk [vmem:[%s313_s14 + $0x8] sm:$0xff] %vm488_vm3, %v487_v37  ;;  %495 = vrot.lane.b32.xlu1 %v487_v37, %s724_s15  ;;  %522 = vperm.xlu2 %700, %v518_v36  }
 0x206   : > { %v494_v38 = vpop.permute.xlu2 %493 }
 0x207   : > { %v500_v40 = vsel %vm499_vm4, 0.0, %v494_v38 }
 0x20e   : > { %v523_v52 = vpop.permute.xlu2 %522 }
 0x226   : > { %v496_v39 = vpop.permute.xlu1 %495 }
 0x227   : > { %v501_v41 = vsel %vm499_vm4, 0.0, %v496_v39 }
 0x228   : > { %v706_v42 = vpack.i.bf16 %v500_v40, %v501_v41 }
 0x22a   : > { %707 = vrot.lane.b32.xlu1 %v706_v42, %s720_s19  ;;  %702 = vrot.lane.b32.xlu0 %v706_v42, %s723_s24 }
 0x232   : > { %527 = vperm.xlu0 %699, %v519_v43  }
 0x29c   : > { %v703_v44 = vpop.permute.xlu0 %702  ;;  %v708_v46 = vpop.permute.xlu1 %707 }
 0x29d   : > { %v704_v45 = vunpack.i.l.bf16 %v703_v44  ;;  %v705_v47 = vunpack.i.h.bf16 %v703_v44  ;;  %v709_v48 = vunpack.i.l.bf16 %v708_v46  ;;  %v710_v49 = vunpack.i.h.bf16 %v708_v46 }
 0x29f   : > { %547 = vmatpush.msra.mxu0 %v704_v45 }
 0x2a1   : > { %548 = vmatpush.msra.mxu0 %v705_v47 }
 0x2a3   : > { %549 = vmatpush.msra.mxu0 %v709_v48 }
 0x2a4   : > { %v528_v56 = vpop.permute.xlu0 %527 }
 0x2a5   : > { %550 = vmatpush.msra.mxu0 %v710_v49 }
 0x2a7   : > { %675 = vmatpush.msk.msra.mxu0 %vm674_vm5, %v496_v39 }
 0x2a9   : > { %677 = vmatpush.msk.msra.mxu0 %vm674_vm5, %v494_v38 }
 0x2aa   : > { %678 = vmatmul.msk.f32.vlgmr.msra.gmra.mxu0 %vm530_vm6, %v516_v50 }
 0x2b2   : > { %679 = vmatmul.msk.f32.gmra.mxu0 %vm530_vm6, %v517_v51 }
 0x327   : > { %v554_v53 = vpop.f32.mrf.mxu0 }
 0x328   : > { %v555_v54 = vadd.f32 %v554_v53, %v523_v52 }
 0x32a   : > { %v560_v55 = vmax.f32 %v555_v54, 0.0 }
 0x32c   : > { %563 = vst.msk [vmem:[%s318_s26] sm:$0xff] %vm562_vm7, %v560_v55 }
 0x32f   : > { %v557_v57 = vpop.f32.mrf.mxu0 }
 0x330   : > { %v558_v58 = vadd.f32 %v557_v57, %v528_v56 }
 0x332   : > { %v561_v59 = vmax.f32 %v558_v58, 0.0 }
 0x334   : > { %564 = vst.msk [vmem:[%s318_s26 + $0x8] sm:$0xff] %vm562_vm7, %v561_v59 }
 0x335 PF: > { %s19_s27 = sadd.s32 1, %s717_s27  }
 0x336   : > { %p16_p4 = scmp.ge.s32.totalorder %s19_s27, 4  }
 0x338   :  { %18 = sbr.rel (!%p16_p4) target bundleno = 1 (0x1), region = 90 }

</bundles_post_ra>
